<compile_context>
chip_gen: v5e
topology: v5e:2x2
jax: 0.10.0
libtpu: 0.0.40
codegen_flags: <defaults>
</compile_context>

<pallas_src>
import jax
import jax.numpy as jnp
from jax import lax
from jax.experimental import pallas as pl
from jax.experimental.pallas import tpu as pltpu  # noqa: F401  (TPU tuning hooks)

EPS = 1e-5

# Contract the last dim of lhs with the last dim of rhs: x(B,K) . w(E,K) -> (B,E).
# This lets the MXU consume torch-layout (out, in) weights directly (trans_b),
# so the wrapper never materializes a transpose.
_DN_TRANS_B = (((1,), (1,)), ((), ()))


def _bn_relu(y, gamma, beta):
    # BatchNorm1d (training): batch mean, biased variance, eps inside rsqrt.
    # Folded affine: relu(centered * (gamma * rsqrt(var+eps)) + beta).
    mean = jnp.mean(y, axis=0, keepdims=True)
    centered = y - mean                       # computed once, reused below
    var = jnp.mean(centered * centered, axis=0, keepdims=True)
    scale = gamma * lax.rsqrt(var + EPS)
    return jnp.maximum(centered * scale + beta, 0.0)


def head_kernel(x_ref, w1_ref, w2_ref, w3_ref, vec_ref, z_ref, p_ref):
    x = x_ref[...]
    vecs = vec_ref[...]
    g1, beta1 = vecs[0:1, :], vecs[1:2, :]
    g2, beta2 = vecs[2:3, :], vecs[3:4, :]
    b3 = vecs[4:5, :]

    # proj_head: Linear (bias cancelled by training-mode BN) -> BN -> ReLU
    y1 = lax.dot_general(x, w1_ref[...], _DN_TRANS_B,
                         preferred_element_type=jnp.float32)
    z = _bn_relu(y1, g1, beta1)
    z_ref[...] = z

    # pred_head: Linear (bias cancelled) -> BN -> ReLU -> Linear (+ bias)
    y2 = lax.dot_general(z, w2_ref[...], _DN_TRANS_B,
                         preferred_element_type=jnp.float32)
    h = _bn_relu(y2, g2, beta2)
    p_ref[...] = lax.dot_general(h, w3_ref[...], _DN_TRANS_B,
                                 preferred_element_type=jnp.float32) + b3


def pack_head_vectors(params):
    """Pack all per-feature vectors into one (5, E) slab.

    Call ONCE per parameter update (or once at init for inference) — not per
    forward — so the pallas_call wrapper adds no extra HLO dispatches.
    Linear1/Linear2 biases are omitted: they cancel under training-mode BN.
    """
    return jnp.stack(
        [params["g1"], params["beta1"], params["g2"], params["beta2"], params["b3"]],
        axis=0,
    )


def head_forward(x, w1, w2, w3, vecs):
    """Fused forward.

    x:    (B, in_dim) f32
    w1:   (embd_dim, in_dim)   torch layout (out, in) — NOT transposed
    w2/w3:(embd_dim, embd_dim) torch layout (out, in) — NOT transposed
    vecs: (5, embd_dim) packed [g1, beta1, g2, beta2, b3] from pack_head_vectors
    Returns (z, p), each (B, embd_dim) f32.
    """
    B, D = x.shape
    E = w1.shape[0]

    full = lambda shape: pl.BlockSpec(shape, lambda: tuple(0 for _ in shape))

    z, p = pl.pallas_call(
        head_kernel,
        out_shape=(
            jax.ShapeDtypeStruct((B, E), jnp.float32),
            jax.ShapeDtypeStruct((B, E), jnp.float32),
        ),
        grid=(),
        in_specs=[
            full((B, D)),     # x
            full((E, D)),     # w1 (torch layout)
            full((E, E)),     # w2 (torch layout)
            full((E, E)),     # w3 (torch layout)
            full((5, E)),     # packed per-feature vectors
        ],
        out_specs=(full((B, E)), full((B, E))),
    )(x, w1, w2, w3, vecs)
    return z, p


def _reference(x, params):
    """Pure-JAX replica of the PyTorch module (Linear biases kept)."""
    def bn(y, g, b):
        m = jnp.mean(y, axis=0, keepdims=True)
        v = jnp.mean((y - m) ** 2, axis=0, keepdims=True)
        return (y - m) / jnp.sqrt(v + EPS) * g + b

    z = jnp.maximum(bn(x @ params["w1"].T + params["b1"], params["g1"], params["beta1"]), 0.0)
    h = jnp.maximum(bn(z @ params["w2"].T + params["b2"], params["g2"], params["beta2"]), 0.0)
    p = h @ params["w3"].T + params["b3"]
    return z, p


if __name__ == "__main__":
    in_dim = 64
    embd_dim = 128   # lane-dense output width (multiple of 128)
    batch = 8

    key = jax.random.PRNGKey(0)
    keys = jax.random.split(key, 12)

    # Deterministic synthetic parameters (torch layout: Linear weight (out, in)).
    params = {
        "w1": 0.1 * jax.random.normal(keys[0], (embd_dim, in_dim), jnp.float32),
        "b1": 0.1 * jax.random.normal(keys[1], (embd_dim,), jnp.float32),
        "g1": 1.0 + 0.1 * jax.random.normal(keys[2], (embd_dim,), jnp.float32),
        "beta1": 0.1 * jax.random.normal(keys[3], (embd_dim,), jnp.float32),
        "w2": 0.1 * jax.random.normal(keys[4], (embd_dim, embd_dim), jnp.float32),
        "b2": 0.1 * jax.random.normal(keys[5], (embd_dim,), jnp.float32),
        "g2": 1.0 + 0.1 * jax.random.normal(keys[6], (embd_dim,), jnp.float32),
        "beta2": 0.1 * jax.random.normal(keys[7], (embd_dim,), jnp.float32),
        "w3": 0.1 * jax.random.normal(keys[8], (embd_dim, embd_dim), jnp.float32),
        "b3": 0.1 * jax.random.normal(keys[9], (embd_dim,), jnp.float32),
    }

    x = jax.random.normal(keys[10], (batch, in_dim), jnp.float32)

    # One-time parameter prep (outside the per-call path): pack the vector slab.
    vecs = pack_head_vectors(params)
    jax.block_until_ready(vecs)

    z, p = head_forward(x, params["w1"], params["w2"], params["w3"], vecs)
    jax.block_until_ready((z, p))

    ref_z, ref_p = _reference(x, params)
    assert jnp.allclose(z, ref_z, atol=1e-4, rtol=1e-4), "z mismatch"
    assert jnp.allclose(p, ref_p, atol=1e-4, rtol=1e-4), "p mismatch"

    print("KERNEL_OK")
</pallas_src>

<mosaic_0001>
module attributes {stable_mosaic.version = 11 : i64} {
  func.func @head_kernel(%arg0: memref<8x64xf32, #tpu.memory_space<vmem>>, %arg1: memref<128x64xf32, #tpu.memory_space<vmem>>, %arg2: memref<128x128xf32, #tpu.memory_space<vmem>>, %arg3: memref<128x128xf32, #tpu.memory_space<vmem>>, %arg4: memref<5x128xf32, #tpu.memory_space<vmem>>, %arg5: memref<8x128xf32, #tpu.memory_space<vmem>>, %arg6: memref<8x128xf32, #tpu.memory_space<vmem>>) attributes {dimension_semantics = [], scalar_prefetch = 0 : i64, scratch_operands = 0 : i64, tpu.core_type = #tpu.core_type<tc>} {
    %c0 = arith.constant 0 : index
    %c0_0 = arith.constant 0 : index
    %0 = vector.load %arg0[%c0, %c0_0] : memref<8x64xf32, #tpu.memory_space<vmem>>, vector<8x64xf32>
    %c0_1 = arith.constant 0 : index
    %c0_2 = arith.constant 0 : index
    %1 = vector.load %arg4[%c0_1, %c0_2] : memref<5x128xf32, #tpu.memory_space<vmem>>, vector<5x128xf32>
    %2 = vector.extract_strided_slice %1 {offsets = [0, 0], sizes = [1, 128], strides = [1, 1]} : vector<5x128xf32> to vector<1x128xf32>
    %3 = vector.extract_strided_slice %1 {offsets = [1, 0], sizes = [1, 128], strides = [1, 1]} : vector<5x128xf32> to vector<1x128xf32>
    %4 = vector.extract_strided_slice %1 {offsets = [2, 0], sizes = [1, 128], strides = [1, 1]} : vector<5x128xf32> to vector<1x128xf32>
    %5 = vector.extract_strided_slice %1 {offsets = [3, 0], sizes = [1, 128], strides = [1, 1]} : vector<5x128xf32> to vector<1x128xf32>
    %6 = vector.extract_strided_slice %1 {offsets = [4, 0], sizes = [1, 128], strides = [1, 1]} : vector<5x128xf32> to vector<1x128xf32>
    %c0_3 = arith.constant 0 : index
    %c0_4 = arith.constant 0 : index
    %7 = vector.load %arg1[%c0_3, %c0_4] : memref<128x64xf32, #tpu.memory_space<vmem>>, vector<128x64xf32>
    %cst = arith.constant dense<0.000000e+00> : vector<8x128xf32>
    %8 = tpu.matmul %0, %7, %cst {dimension_numbers = #tpu.dot_dimension_numbers<[1], [1], [0], [0], [0, 0, 1, 0], [], []>} : vector<8x64xf32>, vector<128x64xf32>, vector<8x128xf32> -> vector<8x128xf32>
    %cst_5 = arith.constant dense<0.000000e+00> : vector<128xf32>
    %9 = vector.multi_reduction <add>, %8, %cst_5 [0] : vector<8x128xf32> to vector<128xf32>
    %10 = vector.shape_cast %9 : vector<128xf32> to vector<1x128xf32>
    %cst_6 = arith.constant 8.000000e+00 : f32
    %11 = vector.broadcast %cst_6 : f32 to vector<1x128xf32>
    %12 = arith.divf %10, %11 : vector<1x128xf32>
    %13 = vector.broadcast %12 : vector<1x128xf32> to vector<8x128xf32>
    %14 = arith.subf %8, %13 : vector<8x128xf32>
    %15 = arith.mulf %14, %14 : vector<8x128xf32>
    %cst_7 = arith.constant dense<0.000000e+00> : vector<128xf32>
    %16 = vector.multi_reduction <add>, %15, %cst_7 [0] : vector<8x128xf32> to vector<128xf32>
    %17 = vector.shape_cast %16 : vector<128xf32> to vector<1x128xf32>
    %cst_8 = arith.constant 8.000000e+00 : f32
    %18 = vector.broadcast %cst_8 : f32 to vector<1x128xf32>
    %19 = arith.divf %17, %18 : vector<1x128xf32>
    %cst_9 = arith.constant 9.99999974E-6 : f32
    %20 = vector.broadcast %cst_9 : f32 to vector<1x128xf32>
    %21 = arith.addf %19, %20 : vector<1x128xf32>
    %22 = math.rsqrt %21 : vector<1x128xf32>
    %23 = arith.mulf %2, %22 : vector<1x128xf32>
    %24 = vector.broadcast %23 : vector<1x128xf32> to vector<8x128xf32>
    %25 = arith.mulf %14, %24 : vector<8x128xf32>
    %26 = vector.broadcast %3 : vector<1x128xf32> to vector<8x128xf32>
    %27 = arith.addf %25, %26 : vector<8x128xf32>
    %cst_10 = arith.constant 0.000000e+00 : f32
    %28 = vector.broadcast %cst_10 : f32 to vector<8x128xf32>
    %29 = arith.maximumf %27, %28 : vector<8x128xf32>
    %c0_11 = arith.constant 0 : index
    %c0_12 = arith.constant 0 : index
    %30 = vector.load %arg5[%c0_11, %c0_12] : memref<8x128xf32, #tpu.memory_space<vmem>>, vector<8x128xf32>
    tpu.vector_store %arg5[%c0_11, %c0_12], %29 {strides = array<i32>} : memref<8x128xf32, #tpu.memory_space<vmem>>, vector<8x128xf32>,
    %c0_13 = arith.constant 0 : index
    %c0_14 = arith.constant 0 : index
    %31 = vector.load %arg2[%c0_13, %c0_14] : memref<128x128xf32, #tpu.memory_space<vmem>>, vector<128x128xf32>
    %cst_15 = arith.constant dense<0.000000e+00> : vector<8x128xf32>
    %32 = tpu.matmul %29, %31, %cst_15 {dimension_numbers = #tpu.dot_dimension_numbers<[1], [1], [0], [0], [0, 0, 1, 0], [], []>} : vector<8x128xf32>, vector<128x128xf32>, vector<8x128xf32> -> vector<8x128xf32>
    %cst_16 = arith.constant dense<0.000000e+00> : vector<128xf32>
    %33 = vector.multi_reduction <add>, %32, %cst_16 [0] : vector<8x128xf32> to vector<128xf32>
    %34 = vector.shape_cast %33 : vector<128xf32> to vector<1x128xf32>
    %cst_17 = arith.constant 8.000000e+00 : f32
    %35 = vector.broadcast %cst_17 : f32 to vector<1x128xf32>
    %36 = arith.divf %34, %35 : vector<1x128xf32>
    %37 = vector.broadcast %36 : vector<1x128xf32> to vector<8x128xf32>
    %38 = arith.subf %32, %37 : vector<8x128xf32>
    %39 = arith.mulf %38, %38 : vector<8x128xf32>
    %cst_18 = arith.constant dense<0.000000e+00> : vector<128xf32>
    %40 = vector.multi_reduction <add>, %39, %cst_18 [0] : vector<8x128xf32> to vector<128xf32>
    %41 = vector.shape_cast %40 : vector<128xf32> to vector<1x128xf32>
    %cst_19 = arith.constant 8.000000e+00 : f32
    %42 = vector.broadcast %cst_19 : f32 to vector<1x128xf32>
    %43 = arith.divf %41, %42 : vector<1x128xf32>
    %cst_20 = arith.constant 9.99999974E-6 : f32
    %44 = vector.broadcast %cst_20 : f32 to vector<1x128xf32>
    %45 = arith.addf %43, %44 : vector<1x128xf32>
    %46 = math.rsqrt %45 : vector<1x128xf32>
    %47 = arith.mulf %4, %46 : vector<1x128xf32>
    %48 = vector.broadcast %47 : vector<1x128xf32> to vector<8x128xf32>
    %49 = arith.mulf %38, %48 : vector<8x128xf32>
    %50 = vector.broadcast %5 : vector<1x128xf32> to vector<8x128xf32>
    %51 = arith.addf %49, %50 : vector<8x128xf32>
    %cst_21 = arith.constant 0.000000e+00 : f32
    %52 = vector.broadcast %cst_21 : f32 to vector<8x128xf32>
    %53 = arith.maximumf %51, %52 : vector<8x128xf32>
    %c0_22 = arith.constant 0 : index
    %c0_23 = arith.constant 0 : index
    %54 = vector.load %arg3[%c0_22, %c0_23] : memref<128x128xf32, #tpu.memory_space<vmem>>, vector<128x128xf32>
    %cst_24 = arith.constant dense<0.000000e+00> : vector<8x128xf32>
    %55 = tpu.matmul %53, %54, %cst_24 {dimension_numbers = #tpu.dot_dimension_numbers<[1], [1], [0], [0], [0, 0, 1, 0], [], []>} : vector<8x128xf32>, vector<128x128xf32>, vector<8x128xf32> -> vector<8x128xf32>
    %56 = vector.broadcast %6 : vector<1x128xf32> to vector<8x128xf32>
    %57 = arith.addf %55, %56 : vector<8x128xf32>
    %c0_25 = arith.constant 0 : index
    %c0_26 = arith.constant 0 : index
    %58 = vector.load %arg6[%c0_25, %c0_26] : memref<8x128xf32, #tpu.memory_space<vmem>>, vector<8x128xf32>
    tpu.vector_store %arg6[%c0_25, %c0_26], %57 {strides = array<i32>} : memref<8x128xf32, #tpu.memory_space<vmem>>, vector<8x128xf32>,
    return
  }
}

</mosaic_0001>

<bundles_post_ra>
// kernel: tpu_custom_call.1
= control target key start
LH: loop header
LB: loop body
LE: loop exit
PB: predicated region body
PF: predicated region fallthrough
CT: control target
= control target key end

     0   :  { %12 = vsyncpa [#allocation3], 0  ;;  %s600_s0 = inlined_call_operand.vmem [shape: f32[8,64], index: 0, kind: input, shape index: {}]   ;;  %s601_s1 = inlined_call_operand.vmem [shape: f32[128,64], index: 1, kind: input, shape index: {}]   ;;  %s602_s2 = inlined_call_operand.vmem [shape: f32[128,128], index: 2, kind: input, shape index: {}]   ;;  %s603_s3 = inlined_call_operand.hbm [shape: f32[128,128], index: 3, kind: input, shape index: {}]   ;;  %s604_s4 = inlined_call_operand.vmem [shape: f32[5,128], index: 4, kind: input, shape index: {}]   ;;  %s605_s5 = inlined_call_operand.hbm [shape: f32[8,128], index: 5, kind: output, shape index: {0}]   ;;  %s606_s6 = inlined_call_operand.hbm [shape: f32[8,128], index: 6, kind: output, shape index: {1}]  }
   0x1   :  { %13 = vsyncpa [#allocation4], 0 }
   0x2   :  { %14 = vsyncpa [#allocation7], 0  ;;  %s25_s23 = sshll.u32 %s603_s3, 4  ;;  %s418_s24 = smov [#allocation2]   ;;  %s26_s23 = int_to_ptr.hbm [resolvable:$true] %s25_s23 }
   0x3   :  { %s27_s25 = sshll.u32 %s418_s24, 4  ;;  %s419_s26 = smov 128   ;;  %s28_s25 = int_to_ptr.vmem [resolvable:$true] %s27_s25 }
   0x4   :  { %s420_s27 = smov 8  }
   0x5   :  { %33 = dma.hbm_to_vmem [thread:$0]  %s26_s23, 2048, %s28_s25, [#allocation3], %s419_s26, %s419_s26, %s420_s27  }
   0x6   :  { %412 = dma.done.wait [#allocation3], 2048  }
   0x7   :  { %413 = vsyncadd [#allocation3], 4294965248  ;;  %vm58_vm0 = vcmask 523264   ;;  %v57_v0 = vld [vmem:[%s601_s1 + $0x78] sm:$0xff]  ;;  %v56_v1 = vld [vmem:[%s601_s1 + $0x70] sm:$0xff]  ;;  %v421_v22 = vmov 8.0  }
   0x8   :  { %311 = vmatpush.xpose.msk.msra.mxu0 %vm58_vm0, %v57_v0  ;;  %v55_v2 = vld [vmem:[%s601_s1 + $0x68] sm:$0xff]  ;;  %v54_v3 = vld [vmem:[%s601_s1 + $0x60] sm:$0xff]  ;;  %v53_v4 = vld [vmem:[%s601_s1 + $0x58] sm:$0xff]  ;;  %334 = vrcp.f32 %v421_v22  ;;  %s285_s19 = sshll.u32 %s605_s5, 4  ;;  %s423_s20 = smov [#allocation6]   ;;  %s286_s19 = int_to_ptr.hbm [resolvable:$true] %s285_s19 }
   0x9   :  { %v52_v5 = vld [vmem:[%s601_s1 + $0x50] sm:$0xff]  ;;  %v51_v6 = vld [vmem:[%s601_s1 + $0x48] sm:$0xff]  ;;  %v50_v7 = vld [vmem:[%s601_s1 + $0x40] sm:$0xff]  ;;  %s294_s21 = sshll.u32 %s423_s20, 4  ;;  %s296_s24 = sshll.u32 %s606_s6, 4  ;;  %s295_s21 = int_to_ptr.vmem [resolvable:$true] %s294_s21  ;;  %s297_s24 = int_to_ptr.hbm [resolvable:$true] %s296_s24 }
   0xa   :  { %v49_v8 = vld [vmem:[%s601_s1 + $0x38] sm:$0xff]  ;;  %v48_v9 = vld [vmem:[%s601_s1 + $0x30] sm:$0xff]  ;;  %v47_v10 = vld [vmem:[%s601_s1 + $0x28] sm:$0xff] }
   0xb   :  { %v46_v11 = vld [vmem:[%s601_s1 + $0x20] sm:$0xff]  ;;  %v45_v12 = vld [vmem:[%s601_s1 + $0x18] sm:$0xff]  ;;  %v44_v13 = vld [vmem:[%s601_s1 + $0x10] sm:$0xff] }
   0xc   :  { %312 = vmatpush.xpose.msk.msra.mxu0 %vm58_vm0, %v56_v1  ;;  %v43_v14 = vld [vmem:[%s601_s1 + $0x8] sm:$0xff]  ;;  %v42_v15 = vld [vmem:[%s601_s1] sm:$0xff]  ;;  %v186_v17 = vld [vmem:[%s602_s2 + $0x78] sm:$0xff] }
   0xd   :  { %v40_v16 = vld [vmem:[%s600_s0] sm:$0xff]  ;;  %187 = vmatpush.xpose.msra.mxu1 %v186_v17  ;;  %v185_v18 = vld [vmem:[%s602_s2 + $0x70] sm:$0xff]  ;;  %v184_v19 = vld [vmem:[%s602_s2 + $0x68] sm:$0xff] }
   0xe   :  { %v183_v20 = vld [vmem:[%s602_s2 + $0x60] sm:$0xff]  ;;  %v182_v21 = vld [vmem:[%s602_s2 + $0x58] sm:$0xff]  ;;  %v181_v23 = vld [vmem:[%s602_s2 + $0x50] sm:$0xff]  ;;  %v335_v24 = vpop.eup %334 }
   0xf   :  { %v180_v25 = vld [vmem:[%s602_s2 + $0x48] sm:$0xff]  ;;  %v137_v26 = vmul.f32 8.0, %v335_v24  ;;  %v179_v27 = vld [vmem:[%s602_s2 + $0x40] sm:$0xff]  ;;  %v178_v29 = vld [vmem:[%s602_s2 + $0x38] sm:$0xff]  ;;  %vm141_vm1 = vweird.f32 %v335_v24 }
  0x10   :  { %313 = vmatpush.xpose.msk.msra.mxu0 %vm58_vm0, %v55_v2  ;;  %v177_v34 = vld [vmem:[%s602_s2 + $0x30] sm:$0xff]  ;;  %v176_v38 = vld [vmem:[%s602_s2 + $0x28] sm:$0xff]  ;;  %v175_v42 = vld [vmem:[%s602_s2 + $0x20] sm:$0xff] }
  0x11   :  { %188 = vmatpush.xpose.msra.mxu1 %v185_v18  ;;  %v138_v28 = vsub.f32 1.0, %v137_v26  ;;  %v174_v45 = vld [vmem:[%s602_s2 + $0x18] sm:$0xff]  ;;  %v173_v48 = vld [vmem:[%s602_s2 + $0x10] sm:$0xff]  ;;  %v172_v51 = vld [vmem:[%s602_s2 + $0x8] sm:$0xff] }
  0x12   :  { %v171_v53 = vld [vmem:[%s602_s2] sm:$0xff]  ;;  %s422_s2 = smov [#allocation5]  }
  0x13   :  { %v139_v32 = vmul.f32 %v335_v24, %v138_v28  ;;  %v585_v63 = vld [vmem:[%s604_s4] sm:$0x1f]  ;;  %s283_s4 = sshll.u32 %s422_s2, 4  ;;  %s284_s4 = int_to_ptr.vmem [resolvable:$true] %s283_s4 }
  0x14   :  { %314 = vmatpush.xpose.msk.msra.mxu0 %vm58_vm0, %v54_v3  ;;  %v244_v26 = vld [vmem:[#allocation2 + $0x20] sm:$0xff] }
  0x15   :  { %189 = vmatpush.xpose.msra.mxu1 %v184_v19  ;;  %v140_v36 = vadd.f32 %v335_v24, %v139_v32  ;;  %v242_v32 = vld [vmem:[#allocation2 + $0x10] sm:$0xff] }
  0x17   :  { %v563_v40 = vsel %vm141_vm1, %v335_v24, %v140_v36 }
  0x18   :  { %315 = vmatpush.xpose.msk.msra.mxu0 %vm58_vm0, %v53_v4  ;;  %v167_v4 = vperm.slane %v585_v63, 1 }
  0x19   :  { %190 = vmatpush.xpose.msra.mxu1 %v183_v20  ;;  %v246_v20 = vld [vmem:[#allocation2 + $0x30] sm:$0xff] }
  0x1c   :  { %316 = vmatpush.xpose.msk.msra.mxu0 %vm58_vm0, %v52_v5 }
  0x1d   :  { %191 = vmatpush.xpose.msra.mxu1 %v182_v21 }
  0x20   :  { %317 = vmatpush.xpose.msk.msra.mxu0 %vm58_vm0, %v51_v6 }
  0x21   :  { %192 = vmatpush.xpose.msra.mxu1 %v181_v23  ;;  %v245_v23 = vld [vmem:[#allocation2 + $0x28] sm:$0xff] }
  0x24   :  { %318 = vmatpush.xpose.msk.msra.mxu0 %vm58_vm0, %v50_v7 }
  0x25   :  { %193 = vmatpush.xpose.msra.mxu1 %v180_v25 }
  0x28   :  { %319 = vmatpush.xpose.msk.msra.mxu0 %vm58_vm0, %v49_v8  ;;  %v255_v8 = vld [vmem:[#allocation2 + $0x78] sm:$0xff] }
  0x29   :  { %194 = vmatpush.xpose.msra.mxu1 %v179_v27  ;;  %257 = vmatpush.xpose.msra.mxu2 %v255_v8 }
  0x2c   :  { %320 = vmatpush.xpose.msk.msra.mxu0 %vm58_vm0, %v48_v9  ;;  %v254_v9 = vld [vmem:[#allocation2 + $0x70] sm:$0xff] }
  0x2d   :  { %195 = vmatpush.xpose.msra.mxu1 %v178_v29  ;;  %258 = vmatpush.xpose.msra.mxu2 %v254_v9  ;;  %v243_v29 = vld [vmem:[#allocation2 + $0x18] sm:$0xff] }
  0x30   :  { %321 = vmatpush.xpose.msk.msra.mxu0 %vm58_vm0, %v47_v10  ;;  %v253_v10 = vld [vmem:[#allocation2 + $0x68] sm:$0xff] }
  0x31   :  { %196 = vmatpush.xpose.msra.mxu1 %v177_v34  ;;  %259 = vmatpush.xpose.msra.mxu2 %v253_v10 }
  0x34   :  { %322 = vmatpush.xpose.msk.msra.mxu0 %vm58_vm0, %v46_v11  ;;  %v252_v11 = vld [vmem:[#allocation2 + $0x60] sm:$0xff] }
  0x35   :  { %197 = vmatpush.xpose.msra.mxu1 %v176_v38  ;;  %260 = vmatpush.xpose.msra.mxu2 %v252_v11 }
  0x38   :  { %323 = vmatpush.xpose.msk.msra.mxu0 %vm58_vm0, %v45_v12  ;;  %v251_v12 = vld [vmem:[#allocation2 + $0x58] sm:$0xff] }
  0x39   :  { %198 = vmatpush.xpose.msra.mxu1 %v175_v42  ;;  %261 = vmatpush.xpose.msra.mxu2 %v251_v12 }
  0x3c   :  { %324 = vmatpush.xpose.msk.msra.mxu0 %vm58_vm0, %v44_v13  ;;  %v250_v13 = vld [vmem:[#allocation2 + $0x50] sm:$0xff] }
  0x3d   :  { %199 = vmatpush.xpose.msra.mxu1 %v174_v45  ;;  %262 = vmatpush.xpose.msra.mxu2 %v250_v13 }
  0x40   :  { %325 = vmatpush.xpose.msk.msra.mxu0 %vm58_vm0, %v43_v14  ;;  %v249_v14 = vld [vmem:[#allocation2 + $0x48] sm:$0xff] }
  0x41   :  { %200 = vmatpush.xpose.msra.mxu1 %v173_v48  ;;  %263 = vmatpush.xpose.msra.mxu2 %v249_v14 }
  0x44   :  { %326 = vmatpush.xpose.msk.msra.mxu0 %vm58_vm0, %v42_v15  ;;  %v248_v15 = vld [vmem:[#allocation2 + $0x40] sm:$0xff] }
  0x45   :  { %201 = vmatpush.xpose.msra.mxu1 %v172_v51  ;;  %264 = vmatpush.xpose.msra.mxu2 %v248_v15 }
  0x47   :  { %327 = vmatmul.msk.f32.vlgmr.msra.gmra.mxu0 %vm58_vm0, %v40_v16  ;;  %v247_v16 = vld [vmem:[#allocation2 + $0x38] sm:$0xff] }
  0x49   :  { %202 = vmatpush.xpose.msra.mxu1 %v171_v53  ;;  %265 = vmatpush.xpose.msra.mxu2 %v247_v16 }
  0x4d   :  { %266 = vmatpush.xpose.msra.mxu2 %v246_v20 }
  0x51   :  { %267 = vmatpush.xpose.msra.mxu2 %v245_v23 }
  0x55   :  { %268 = vmatpush.xpose.msra.mxu2 %v244_v26 }
  0x59   :  { %269 = vmatpush.xpose.msra.mxu2 %v243_v29 }
  0x5d   :  { %270 = vmatpush.xpose.msra.mxu2 %v242_v32 }
  0xc4   :  { %v127_v30 = vpop.f32.mrf.mxu0 }
  0xc5   :  { %v130_v31 = vrot.slane %v127_v30, 4 }
  0xc7   :  { %v131_v33 = vadd.f32 %v130_v31, %v127_v30 }
  0xc9   :  { %v132_v35 = vrot.slane %v131_v33, 2 }
  0xcb   :  { %v133_v37 = vadd.f32 %v132_v35, %v131_v33  ;;  %v241_v35 = vld [vmem:[#allocation2 + $0x8] sm:$0xff] }
  0xcc   :  { %271 = vmatpush.xpose.msra.mxu2 %v241_v35 }
  0xcd   :  { %v134_v39 = vrot.slane %v133_v37, 1 }
  0xcf   :  { %v135_v41 = vadd.f32 %v134_v39, %v133_v37  ;;  %v240_v37 = vld [vmem:[#allocation2] sm:$0xff] }
  0xd0   :  { %272 = vmatpush.xpose.msra.mxu2 %v240_v37 }
  0xd1   :  { %v143_v43 = vmul.f32 %v563_v40, %v135_v41 }
  0xd3   :  { %v144_v44 = vsub.f32 %v127_v30, %v143_v43 }
  0xd5   :  { %v145_v46 = vmul.f32 %v144_v44, %v144_v44 }
  0xd7   :  { %v146_v47 = vrot.slane %v145_v46, 4 }
  0xd9   :  { %v147_v49 = vadd.f32 %v146_v47, %v145_v46 }
  0xdb   :  { %v148_v50 = vrot.slane %v147_v49, 2 }
  0xdd   :  { %v149_v52 = vadd.f32 %v148_v50, %v147_v49 }
  0xdf   :  { %v150_v54 = vrot.slane %v149_v52, 1 }
  0xe1   :  { %v151_v55 = vadd.f32 %v150_v54, %v149_v52  ;;  %v237_v52 = vperm.slane %v585_v63, 3 }
  0xe3   :  { %v152_v56 = vmul.f32 %v151_v55, %v563_v40  ;;  %v256_v55 = vperm.slane %v585_v63, 4 }
  0xe5   :  { %v153_v57 = vadd.f32 1e-05, %v152_v56 }
  0xe7   :  { %336 = vrsqrt.f32 %v153_v57  ;;  %vm160_vm3 = vweird.f32 %v153_v57 }
  0xed   :  { %v337_v58 = vpop.eup %336 }
  0xee   :  { %v155_v59 = vmul.f32 %v337_v58, %v153_v57  ;;  %vm161_vm2 = vweird.f32 %v337_v58 }
  0xef   :  { %vm162_vm4 = vmor %vm160_vm3, %vm161_vm2 }
  0xf0   :  { %v156_v60 = vmul.f32 %v337_v58, %v155_v59 }
  0xf2   :  { %v157_v61 = vmul.f32 0.5, %v156_v60 }
  0xf4   :  { %v158_v62 = vsub.f32 1.5, %v157_v61 }
  0xf6   :  { %v159_v0 = vmul.f32 %v337_v58, %v158_v62 }
  0xf8   :  { %v163_v1 = vsel %vm162_vm4, %v337_v58, %v159_v0 }
  0xf9   :  { %v164_v2 = vmul.f32 %v163_v1, %v585_v63 }
  0xfb   :  { %v165_v3 = vperm.slane %v164_v2, 0 }
  0xfd   :  { %v166_v5 = vmul.f32 %v165_v3, %v144_v44 }
  0xff   :  { %v168_v6 = vadd.f32 %v167_v4, %v166_v5 }
 0x101   :  { %v169_v7 = vmax.f32 %v168_v6, 0.0 }
 0x103   :  { %203 = vmatmul.f32.vlgmr.msra.gmra.mxu1 %v169_v7  ;;  %170 = vst [vmem:[#allocation5] sm:$0xff] %v169_v7 }
 0x104   :  { %288 = dma.vmem_to_hbm [thread:$0]  %s284_s4, 128, %s286_s19, [#allocation4]  }
 0x180   :  { %v204_v17 = vpop.f32.mrf.mxu1 }
 0x181   :  { %v207_v18 = vrot.slane %v204_v17, 4 }
 0x183   :  { %v208_v19 = vadd.f32 %v207_v18, %v204_v17 }
 0x185   :  { %v209_v21 = vrot.slane %v208_v19, 2 }
 0x187   :  { %v210_v22 = vadd.f32 %v209_v21, %v208_v19 }
 0x189   :  { %v211_v24 = vrot.slane %v210_v22, 1 }
 0x18b   :  { %v212_v25 = vadd.f32 %v211_v24, %v210_v22 }
 0x18d   :  { %v213_v27 = vmul.f32 %v212_v25, %v563_v40 }
 0x18f   :  { %v214_v28 = vsub.f32 %v204_v17, %v213_v27 }
 0x191   :  { %v215_v30 = vmul.f32 %v214_v28, %v214_v28 }
 0x193   :  { %v216_v31 = vrot.slane %v215_v30, 4 }
 0x195   :  { %v217_v33 = vadd.f32 %v216_v31, %v215_v30 }
 0x197   :  { %v218_v34 = vrot.slane %v217_v33, 2 }
 0x199   :  { %v219_v36 = vadd.f32 %v218_v34, %v217_v33 }
 0x19b   :  { %v220_v38 = vrot.slane %v219_v36, 1 }
 0x19d   :  { %v221_v39 = vadd.f32 %v220_v38, %v219_v36 }
 0x19f   :  { %v222_v41 = vmul.f32 %v221_v39, %v563_v40 }
 0x1a1   :  { %v223_v42 = vadd.f32 1e-05, %v222_v41 }
 0x1a3   :  { %338 = vrsqrt.f32 %v223_v42  ;;  %vm230_vm6 = vweird.f32 %v223_v42 }
 0x1a9   :  { %v339_v43 = vpop.eup %338 }
 0x1aa   :  { %v225_v44 = vmul.f32 %v339_v43, %v223_v42  ;;  %vm231_vm5 = vweird.f32 %v339_v43 }
 0x1ab   :  { %vm232_vm7 = vmor %vm230_vm6, %vm231_vm5 }
 0x1ac   :  { %v226_v45 = vmul.f32 %v339_v43, %v225_v44 }
 0x1ae   :  { %v227_v46 = vmul.f32 0.5, %v226_v45 }
 0x1b0   :  { %v228_v47 = vsub.f32 1.5, %v227_v46 }
 0x1b2   :  { %v229_v48 = vmul.f32 %v339_v43, %v228_v47 }
 0x1b4   :  { %v233_v49 = vsel %vm232_vm7, %v339_v43, %v229_v48 }
 0x1b5   :  { %v234_v50 = vmul.f32 %v233_v49, %v585_v63 }
 0x1b7   :  { %v235_v51 = vperm.slane %v234_v50, 2 }
 0x1b9   :  { %v236_v53 = vmul.f32 %v235_v51, %v214_v28 }
 0x1bb   :  { %v238_v54 = vadd.f32 %v237_v52, %v236_v53 }
 0x1bd   :  { %v239_v40 = vmax.f32 %v238_v54, 0.0 }
 0x1bf   :  { %273 = vmatmul.f32.vlgmr.msra.gmra.mxu2 %v239_v40 }
 0x242   :  { %v274_v56 = vpop.f32.mrf.mxu2 }
 0x243   :  { %v275_v57 = vadd.f32 %v274_v56, %v256_v55 }
 0x245   :  { %277 = vst [vmem:[#allocation6] sm:$0xff] %v275_v57 }
 0x246   :  { %299 = dma.vmem_to_hbm [thread:$0]  %s295_s21, 128, %s297_s24, [#allocation7]  }
 0x247   :  { %414 = dma.done.wait [#allocation4], 128  }
 0x248   :  { %415 = vsyncadd [#allocation4], 4294967168 }
 0x249   :  { %416 = dma.done.wait [#allocation7], 128  }
 0x24a   :  { %417 = vsyncadd [#allocation7], 4294967168 }
 0x24b   :  { %308 = vsyncpa [#allocation3], 1 }
 0x24c   :  { %309 = vsyncpa [#allocation4], 1 }
 0x24d   :  { %310 = vsyncpa [#allocation7], 1 }

</bundles_post_ra>
